<compile_context>
chip_gen: v5e
topology: v5e:2x2
jax: 0.10.0
libtpu: 0.0.40
codegen_flags: <defaults>
</compile_context>

<pallas_src>
import functools

import jax
import jax.numpy as jnp
import numpy as np
from jax.experimental import pallas as pl
from jax.experimental.pallas import tpu as pltpu

LANES = 1024              # lane-dense row width (multiple of 128)
MAX_BLOCK_ROWS = 512      # 512 * 1024 * 4B = 2 MiB f32 per block (v7x-safe)
SUB = 32                  # safe sublane multiple across f32 / bf16 / int8


def _make_qil_kernel(bitA: int, quantize_type: str):
    n = float(2 ** bitA - 1)
    inv_n = 1.0 / n

    def kernel(params_ref, x_ref, o_ref):
        # Scalar parameters precomputed in the wrapper (SMEM).
        p = params_ref[0]
        c = params_ref[1]
        alpha_w = params_ref[2]
        beta_w = params_ref[3]
        itv = params_ref[4]
        inv_itv = params_ref[5]

        x = x_ref[...].astype(jnp.float32)
        ax = jnp.abs(x)

        # |interval_act| == ax inside (p, c), 0 outside; (ax > c) contributes +1.
        in_interval = jnp.logical_and(ax > p, ax < c)
        transformed = (jnp.where(in_interval, ax, 0.0) * alpha_w
                       + jnp.where(ax > c, 1.0 + beta_w, beta_w))

        if quantize_type == "interval":
            # Function_interval_quantize.forward (c clamped to 1.0 like the module);
            # divide replaced by the precomputed scalar reciprocal.
            q = jnp.round((transformed - p) * inv_itv) * itv + p
        else:
            # Function_STE.forward: round(w * n) / n  (1/n is a compile-time constant).
            q = jnp.round(transformed * n) * inv_n

        o_ref[...] = q.astype(o_ref.dtype)

    return kernel


@functools.partial(jax.jit, static_argnames=("bitA", "quantize_type"))
def qil_quant_act(x, pruning_point, clipping_point, bitA=1, quantize_type="STE"):
    """JAX/Pallas equivalent of QIL_QuantAct.forward (forward pass only)."""
    if bitA == 32:
        return x

    orig_shape = x.shape
    orig_dtype = x.dtype
    total = int(x.size)
    if total == 0:
        return x

    n = float(2 ** bitA - 1)

    # ---- scalar precompute (once, outside the kernel) ----------------------
    p = jnp.reshape(pruning_point, ()).astype(jnp.float32)
    c = jnp.reshape(clipping_point, ()).astype(jnp.float32)
    c_w = 0.5 * (p + c)
    d_w = 0.5 * (c - p)
    alpha_w = 0.5 / d_w
    beta_w = -0.5 * c_w / d_w + 0.5
    c_eff = jnp.where(c < 1.0, c, jnp.float32(1.0))
    itv = (c_eff - p) / n
    inv_itv = 1.0 / itv
    params = jnp.stack([p, c, alpha_w, beta_w, itv, inv_itv])

    # ---- lane-dense layout --------------------------------------------------
    xf = x.reshape(-1)
    pad = (-total) % LANES
    if pad:  # static decision; skipped entirely on the aligned common case
        xf = jnp.pad(xf, (0, pad))
    n_rows = (total + pad) // LANES
    x2 = xf.reshape(n_rows, LANES)

    # ---- block / grid choice ------------------------------------------------
    if n_rows <= 2 * SUB:
        # Small input: one full-extent block (always a legal block shape).
        block_rows = n_rows
    else:
        # Aim for >= 2 grid steps (lets v7x megacore use both TCs), cap the
        # block at 2 MiB and keep rows a safe sublane multiple. The last grid
        # step may be a partial block; Pallas masks it.
        per_step = -(-n_rows // 2)
        per_step = -(-per_step // SUB) * SUB
        block_rows = min(per_step, MAX_BLOCK_ROWS)
    grid = pl.cdiv(n_rows, block_rows)

    # in + out blocks, double-buffered, plus headroom.
    block_bytes = block_rows * LANES * max(x2.dtype.itemsize, 4)
    vmem_limit = int(min(max(16 * 1024 * 1024, 6 * block_bytes), 64 * 1024 * 1024))

    kernel = _make_qil_kernel(bitA, quantize_type)

    out2 = pl.pallas_call(
        kernel,
        out_shape=jax.ShapeDtypeStruct((n_rows, LANES), orig_dtype),
        grid=(grid,),
        in_specs=[
            pl.BlockSpec(memory_space=pltpu.MemorySpace.SMEM),   # scalar params
            pl.BlockSpec((block_rows, LANES), lambda i: (i, 0)),  # activations
        ],
        out_specs=pl.BlockSpec((block_rows, LANES), lambda i: (i, 0)),
        compiler_params=pltpu.CompilerParams(
            dimension_semantics=("parallel",),
            vmem_limit_bytes=vmem_limit,
        ),
    )(params, x2)

    out = out2.reshape(-1)
    if pad:
        out = out[:total]
    return out.reshape(orig_shape)


def _reference(x, pruning_point, clipping_point, bitA=1, quantize_type="STE"):
    """Pure-JAX reference mirroring the PyTorch forward (for verification)."""
    x = x.astype(jnp.float32)
    n = float(2 ** bitA - 1)
    p = jnp.reshape(pruning_point, ()).astype(jnp.float32)
    c = jnp.reshape(clipping_point, ()).astype(jnp.float32)
    c_w = 0.5 * (p + c)
    d_w = 0.5 * (c - p)
    alpha_w = 0.5 / d_w
    beta_w = -0.5 * c_w / d_w + 0.5
    ax = jnp.abs(x)
    interval_act = x * ((ax > p) & (ax < c)).astype(jnp.float32)
    transformed = (ax > c).astype(jnp.float32) + alpha_w * jnp.abs(interval_act) + beta_w
    if quantize_type == "interval":
        c_eff = jnp.where(c < 1.0, c, 1.0)
        itv = (c_eff - p) / n
        inv_itv = 1.0 / itv  # same scalar precompute as the kernel
        return jnp.round((transformed - p) * inv_itv) * itv + p
    return jnp.round(transformed * n) * (1.0 / n)


if __name__ == "__main__":
    key = jax.random.PRNGKey(0)
    # NCHW activation tensor, like a conv input in the original codebase.
    x = jax.random.normal(key, (2, 4, 16, 16), dtype=jnp.float32)

    # Deterministic parameter init, matching QIL_QuantAct.__init__:
    #   pruning_point = zeros([]) ; clipping_point = [1.0]
    pruning_point = jnp.zeros((), dtype=jnp.float32)
    clipping_point = jnp.array([1.0], dtype=jnp.float32)

    # STE path (module default, bitA=1)
    out = qil_quant_act(x, pruning_point, clipping_point, bitA=1, quantize_type="STE")
    out = jax.block_until_ready(out)
    ref = _reference(x, pruning_point, clipping_point, bitA=1, quantize_type="STE")
    np.testing.assert_allclose(np.asarray(out), np.asarray(ref), rtol=1e-6, atol=1e-6)
    assert out.shape == x.shape and out.dtype == x.dtype

    # interval path (bitA=2) as a second check
    out_i = qil_quant_act(x, pruning_point, clipping_point, bitA=2, quantize_type="interval")
    out_i = jax.block_until_ready(out_i)
    ref_i = _reference(x, pruning_point, clipping_point, bitA=2, quantize_type="interval")
    np.testing.assert_allclose(np.asarray(out_i), np.asarray(ref_i), rtol=1e-6, atol=1e-6)

    # TODO(synk): backward passes of Function_STE / Function_interval_quantize
    # (custom autograd) are not implemented here; forward only.
    print("KERNEL_OK")
</pallas_src>

<mosaic_0001>
module attributes {stable_mosaic.version = 11 : i64} {
  func.func @kernel(%arg0: i32, %arg1: memref<6xf32, #tpu.memory_space<smem>>, %arg2: memref<2x1024xf32, #tpu.memory_space<vmem>>, %arg3: memref<2x1024xf32, #tpu.memory_space<vmem>>) attributes {dimension_semantics = [#tpu.dimension_semantics<parallel>], iteration_bounds = array<i64: 1>, scalar_prefetch = 0 : i64, scratch_operands = 0 : i64, tpu.core_type = #tpu.core_type<tc>, window_params = [{transform_indices = @transform_0, window_bounds = array<i64: 6>}, {transform_indices = @transform_1, window_bounds = array<i64: 2, 1024>}, {transform_indices = @transform_2, window_bounds = array<i64: 2, 1024>}]} {
    %c0 = arith.constant 0 : index
    %0 = memref.load %arg1[%c0] : memref<6xf32, #tpu.memory_space<smem>>
    %c1 = arith.constant 1 : index
    %1 = memref.load %arg1[%c1] : memref<6xf32, #tpu.memory_space<smem>>
    %c2 = arith.constant 2 : index
    %2 = memref.load %arg1[%c2] : memref<6xf32, #tpu.memory_space<smem>>
    %c3 = arith.constant 3 : index
    %3 = memref.load %arg1[%c3] : memref<6xf32, #tpu.memory_space<smem>>
    %c0_0 = arith.constant 0 : index
    %c0_1 = arith.constant 0 : index
    %4 = vector.load %arg2[%c0_0, %c0_1] : memref<2x1024xf32, #tpu.memory_space<vmem>>, vector<2x1024xf32>
    %5 = math.absf %4 : vector<2x1024xf32>
    %6 = vector.broadcast %0 : f32 to vector<2x1024xf32>
    %7 = arith.cmpf ogt, %5, %6 : vector<2x1024xf32>
    %8 = vector.broadcast %1 : f32 to vector<2x1024xf32>
    %9 = arith.cmpf olt, %5, %8 : vector<2x1024xf32>
    %10 = arith.andi %7, %9 : vector<2x1024xi1>
    %cst = arith.constant 0.000000e+00 : f32
    %11 = vector.broadcast %cst : f32 to vector<2x1024xf32>
    %12 = arith.select %10, %5, %11 : vector<2x1024xi1>, vector<2x1024xf32>
    %13 = vector.broadcast %2 : f32 to vector<2x1024xf32>
    %14 = arith.mulf %12, %13 : vector<2x1024xf32>
    %15 = vector.broadcast %1 : f32 to vector<2x1024xf32>
    %16 = arith.cmpf ogt, %5, %15 : vector<2x1024xf32>
    %cst_2 = arith.constant 1.000000e+00 : f32
    %17 = arith.addf %cst_2, %3 : f32
    %18 = vector.broadcast %17 : f32 to vector<2x1024xf32>
    %19 = vector.broadcast %3 : f32 to vector<2x1024xf32>
    %20 = arith.select %16, %18, %19 : vector<2x1024xi1>, vector<2x1024xf32>
    %21 = arith.addf %14, %20 : vector<2x1024xf32>
    %cst_3 = arith.constant 1.000000e+00 : f32
    %22 = vector.broadcast %cst_3 : f32 to vector<2x1024xf32>
    %23 = arith.mulf %21, %22 : vector<2x1024xf32>
    %24 = math.roundeven %23 : vector<2x1024xf32>
    %cst_4 = arith.constant 1.000000e+00 : f32
    %25 = vector.broadcast %cst_4 : f32 to vector<2x1024xf32>
    %26 = arith.mulf %24, %25 : vector<2x1024xf32>
    %c0_5 = arith.constant 0 : index
    %c0_6 = arith.constant 0 : index
    %27 = vector.load %arg3[%c0_5, %c0_6] : memref<2x1024xf32, #tpu.memory_space<vmem>>, vector<2x1024xf32>
    tpu.vector_store %arg3[%c0_5, %c0_6], %26 {strides = array<i32>} : memref<2x1024xf32, #tpu.memory_space<vmem>>, vector<2x1024xf32>,
    return
  }
  func.func @transform_0(%arg0: i32) -> i32 {
    %c0_i32 = arith.constant 0 : i32
    %c0_i32_0 = arith.constant 0 : i32
    return %c0_i32 : i32
  }
  func.func @transform_1(%arg0: i32) -> (i32, i32) {
    %c0_i32 = arith.constant 0 : i32
    %c0_i32_0 = arith.constant 0 : i32
    return %arg0, %c0_i32 : i32, i32
  }
  func.func @transform_2(%arg0: i32) -> (i32, i32) {
    %c0_i32 = arith.constant 0 : i32
    %c0_i32_0 = arith.constant 0 : i32
    return %arg0, %c0_i32 : i32, i32
  }
}

</mosaic_0001>

<bundles_post_ra>
// kernel: qil_quant_act.1
= control target key start
LH: loop header
LB: loop body
LE: loop exit
PB: predicated region body
PF: predicated region fallthrough
CT: control target
= control target key end

     0   :  { %7 = vsyncpa [#allocation3], 0  ;;  %s97_s12 = smov [#allocation2]   ;;  %s128_s0 = inlined_call_operand.vmem [shape: f32[6], index: 0, kind: input, shape index: {}]   ;;  %s129_s1 = inlined_call_operand.vmem [shape: f32[2,1024], index: 1, kind: input, shape index: {}]   ;;  %s130_s2 = inlined_call_operand.vmem [shape: f32[2,1024], index: 2, kind: output, shape index: {}]  }
   0x1   :  { %s13_s11 = sshll.u32 %s128_s0, 4  ;;  %s14_s11 = int_to_ptr.vmem [resolvable:$true] %s13_s11 }
   0x2   :  { %16 = dma.vmem_to_smem %s14_s11, 16, %s97_s12, [#allocation3]  }
   0x3   :  { %95 = dma.done.wait [#allocation3], 16  }
   0x4   :  { %96 = vsyncadd [#allocation3], 4294967280 }
   0x5   :  { %23 = sfence }
   0x6   :  { %s24_s13 = sld [smem:[#allocation2]]  ;;  %v28_v0 = vld [vmem:[%s129_s1] sm:$0xff]  ;;  %v29_v1 = vld [vmem:[%s129_s1 + $0x8] sm:$0xff] }
   0x7   :  { %s63_s18 = sld [smem:[#allocation2 + $0x1]]  ;;  %v30_v2 = vand.u32 2147483647, %v28_v0  ;;  %v31_v3 = vand.u32 2147483647, %v29_v1 }
   0x8   :  { %s64_s19 = sld [smem:[#allocation2 + $0x2]] }
   0x9   :  { %s65_s20 = sld [smem:[#allocation2 + $0x3]] }
   0xc   :  { %v32_v4 = vstv %s24_s13 }
   0xd   :  { %vm33_vm0 = vcmp.gt.f32.partialorder %v30_v2, %v32_v4  ;;  %v35_v5 = vstv %s63_s18  ;;  %vm34_vm1 = vcmp.gt.f32.partialorder %v31_v3, %v32_v4 }
   0xe   :  { %vm36_vm2 = vcmp.lt.f32.partialorder %v30_v2, %v35_v5  ;;  %v42_v6 = vstv %s64_s19  ;;  %vm37_vm3 = vcmp.lt.f32.partialorder %v31_v3, %v35_v5  ;;  %vm45_vm5 = vcmp.gt.f32.partialorder %v30_v2, %v35_v5 }
   0xf   :  { %vm38_vm4 = vmand %vm33_vm0, %vm36_vm2  ;;  %s47_s0 = sadd.f32 1.0, %s65_s20  ;;  %v49_v7 = vstv %s65_s20  ;;  %vm46_vm6 = vcmp.gt.f32.partialorder %v31_v3, %v35_v5 }
  0x10   :  { %v40_v8 = vsel %vm38_vm4, %v30_v2, 0.0  ;;  %vm39_vm7 = vmand %vm34_vm1, %vm37_vm3 }
  0x11   :  { %v43_v9 = vmul.f32 %v42_v6, %v40_v8  ;;  %v48_v10 = vstv %s47_s0  ;;  %v41_v11 = vsel %vm39_vm7, %v31_v3, 0.0 }
  0x12   :  { %v50_v12 = vsel %vm45_vm5, %v48_v10, %v49_v7  ;;  %v44_v13 = vmul.f32 %v42_v6, %v41_v11  ;;  %v51_v14 = vsel %vm46_vm6, %v48_v10, %v49_v7 }
  0x13   :  { %v52_v15 = vadd.f32 %v50_v12, %v43_v9 }
  0x14   :  { %v53_v16 = vadd.f32 %v51_v14, %v44_v13 }
  0x15   :  { %v68_v17 = vcvt.f32.s32 %v52_v15  ;;  %v66_v18 = vand.u32 2147483647, %v52_v15  ;;  %v71_v21 = vand.u32 2147483648, %v52_v15 }
  0x16   :  { %v76_v19 = vcvt.f32.s32 %v53_v16  ;;  %v74_v22 = vand.u32 2147483647, %v53_v16  ;;  %v79_v24 = vand.u32 2147483648, %v53_v16 }
  0x17   :  { %v69_v20 = vcvt.s32.f32 %v68_v17  ;;  %vm67_vm8 = vcmp.lt.f32.partialorder %v66_v18, 8388608.0 }
  0x18   :  { %v77_v23 = vcvt.s32.f32 %v76_v19  ;;  %vm75_vm9 = vcmp.lt.f32.partialorder %v74_v22, 8388608.0 }
  0x19   :  { %v70_v25 = vand.u32 2147483647, %v69_v20 }
  0x1a   :  { %v78_v26 = vand.u32 2147483647, %v77_v23 }
  0x1b   :  { %v72_v27 = vor.u32 %v71_v21, %v70_v25 }
  0x1c   :  { %v80_v28 = vor.u32 %v79_v24, %v78_v26 }
  0x1d   :  { %v73_v29 = vsel %vm67_vm8, %v72_v27, %v52_v15 }
  0x1e   :  { %56 = vst [vmem:[%s130_s2] sm:$0xff] %v73_v29  ;;  %v81_v30 = vsel %vm75_vm9, %v80_v28, %v53_v16 }
  0x1f   :  { %57 = vst [vmem:[%s130_s2 + $0x8] sm:$0xff] %v81_v30 }
  0x20   :  { %62 = vsyncpa [#allocation3], 1 }

</bundles_post_ra>
